<compile_context>
chip_gen: v7x
topology: tpu7x:2x2x1
jax: 0.10.0
libtpu: 0.0.40
codegen_flags: <defaults>
</compile_context>

<pallas_src>
import jax
import jax.numpy as jnp
from jax import lax
from jax.experimental import pallas as pl
from jax.experimental.pallas import tpu as pltpu


def _round_up(x, m):
    return (x + m - 1) // m * m


def _vmem_capacity_bytes():
    try:
        return int(pltpu.get_tpu_info().vmem_capacity_bytes)
    except Exception:
        return 64 * 1024 * 1024          # conservative v7x per-TensorCore floor


def _pick_block_rows(Ho, Wo_pad, K4, Cp, in_itemsize, out_itemsize, budget, B):
    """Largest divisor of Ho whose pipelined VMEM footprint fits `budget`.

    Counts lane(128)/sublane padding, double-buffered LHS and output blocks,
    the weight bank (conservatively x2) and the two live f32 parity
    accumulators plus the pooled temporary.
    """
    K4_l = _round_up(K4, 128)
    Cp_l = _round_up(Cp, 128)

    def footprint(T):
        R = (2 * T + 2) * Wo_pad
        lhs = 2 * R * K4_l * in_itemsize                         # 2 pipeline bufs
        wgt = 2 * 2 * 3 * _round_up(K4, 8) * Cp_l * in_itemsize
        out = 2 * T * Wo_pad * Cp_l * out_itemsize
        acc = 2 * (2 * T * Wo_pad) * Cp_l * 4 + T * Wo_pad * Cp_l * 4
        return lhs + wgt + out + acc + (1 << 20)                 # +1 MiB slack

    divs = [t for t in range(1, Ho + 1) if Ho % t == 0]
    feas = [t for t in divs if footprint(t) <= budget] or [1]
    best = max(feas)
    grid = B * (Ho // best)
    if grid < 8 and (grid < 2 or grid % 2):                      # megacore balance
        even = [t for t in feas if (B * (Ho // t)) % 2 == 0 and B * (Ho // t) >= 2]
        if even:
            best = max(even)
    return best


def my_conv_block(x_nchw, params, *, eps=1e-5, compute_dtype=jnp.bfloat16,
                  pool_rows_per_block=None, lhs_buffers=None, nchw_output=True):
    """Fused Conv3x3(s1,p1) + BN(eval) + ReLU + (Dropout=id) + MaxPool2x2.

    x_nchw: (B, C_in, H, W) float32.  Returns (B, C_out, H//2, W//2) float32
    (or pooled NHWC float32 if nchw_output=False).
    """
    w, b, gamma, beta, run_mean, run_var = (
        params["weight"], params["bias"], params["gamma"], params["beta"],
        params["running_mean"], params["running_var"])
    B, C_in, H, W = x_nchw.shape
    C_out = w.shape[0]
    assert H % 2 == 0 and W % 2 == 0, "even spatial dims expected for 2x2 pool"
    Ho, Wo = H // 2, W // 2

    compute_dtype = jnp.dtype(compute_dtype)
    in_itemsize = compute_dtype.itemsize
    sub = 16 if in_itemsize == 2 else 8          # sublane tile (bf16 packs pairs)
    Wo_pad = _round_up(Wo, sub)                  # aligned in-kernel row offsets
    K4 = 4 * C_in                                # 4 column taps per kh
    # Output channel padding: keep unpadded (masked stores) for small C_out or
    # when already lane-aligned; pad to 128 otherwise for unmasked vst.
    Cp = C_out if (C_out % 128 == 0 or C_out <= 32) else _round_up(C_out, 128)
    out_dtype = jnp.float32 if compute_dtype == jnp.float32 else compute_dtype
    out_itemsize = jnp.dtype(out_dtype).itemsize

    cap = _vmem_capacity_bytes()
    vmem_limit = min(max(int(cap * 0.75), 48 * 1024 * 1024), 120 * 1024 * 1024)
    budget = min(int(cap * 0.6), vmem_limit - (8 << 20))
    T = pool_rows_per_block or _pick_block_rows(
        Ho, Wo_pad, K4, Cp, in_itemsize, out_itemsize, budget, B)
    assert Ho % T == 0, "pool_rows_per_block must divide H//2"
    nblk = Ho // T
    R = (2 * T + 2) * Wo_pad       # flattened LHS rows per block (incl. 2-row halo)
    M = 2 * T * Wo_pad             # matmul rows per block

    # ---------------- wrapper-side data prep (~2x input volume) --------------
    x = jnp.transpose(x_nchw, (0, 2, 3, 1))                    # (B, H, W, Cin)
    xp = jnp.pad(x, ((0, 0), (1, 1), (1, 1), (0, 0)))          # (B, H+2, W+2, Cin)
    # 4-tap pool-decimated patch layout: a[b, hp, wo, t*Cin+c] = xp[b, hp, 2wo+t, c]
    taps = [xp[:, :, t: t + 2 * Wo: 2, :] for t in range(4)]
    a = jnp.stack(taps, axis=3).reshape(B, H + 2, Wo, K4)
    a = jnp.pad(a, ((0, 0), (0, 0), (0, Wo_pad - Wo), (0, 0)))
    blocks = [a[:, 2 * T * j: 2 * T * j + 2 * T + 2] for j in range(nblk)]
    a = jnp.stack(blocks, axis=1)                              # (B,nblk,2T+2,Wp,K4)
    lhs = a.reshape(B, nblk, R, K4).astype(compute_dtype)

    # Fold conv bias + BN(eval) into weight scale + per-channel shift; build the
    # two pooling-parity weight banks (parity p uses taps t=p..p+2 <=> kw=t-p).
    scale = gamma / jnp.sqrt(run_var + eps)                    # (C_out,)
    wt = jnp.transpose(w, (2, 3, 1, 0)) * scale[None, None, None, :]   # (3,3,Ci,Co)
    wq = jnp.zeros((2, 3, 4, C_in, C_out), jnp.float32)
    wq = wq.at[0, :, 0:3].set(wt)
    wq = wq.at[1, :, 1:4].set(wt)
    wq = wq.reshape(2, 3, K4, C_out)
    wq = jnp.pad(wq, ((0, 0), (0, 0), (0, 0), (0, Cp - C_out))).astype(compute_dtype)
    shift = beta + (b - run_mean) * scale                      # (C_out,)
    shift = jnp.pad(shift, (0, Cp - C_out)).reshape(1, Cp).astype(jnp.float32)

    # ---------------- fused Pallas kernel ------------------------------------
    def kernel(lhs_ref, w_ref, shift_ref, o_ref):
        xblk = lhs_ref[0, 0]                                   # (R, K4)
        # 3x3 conv for both pooling column parities: 2 x 3 accumulated MXU
        # matmuls over sublane-aligned row-shifted slices of the block.
        xs0 = xblk[0:M, :]
        acc0 = jnp.dot(xs0, w_ref[0, 0], preferred_element_type=jnp.float32)
        acc1 = jnp.dot(xs0, w_ref[1, 0], preferred_element_type=jnp.float32)
        for kh in (1, 2):
            xs = xblk[kh * Wo_pad: kh * Wo_pad + M, :]
            acc0 += jnp.dot(xs, w_ref[0, kh], preferred_element_type=jnp.float32)
            acc1 += jnp.dot(xs, w_ref[1, kh], preferred_element_type=jnp.float32)
        m = jnp.maximum(acc0, acc1)                            # max over col parity
        m = m.reshape(T, 2 * Wo_pad, Cp)                       # aligned row pairs
        pooled = jnp.maximum(m[:, :Wo_pad, :], m[:, Wo_pad:, :])
        z = pooled.reshape(T * Wo_pad, Cp) + shift_ref[...]    # BN shift post-pool
        o_ref[0, 0] = jnp.maximum(z, 0.0).astype(o_ref.dtype)  # ReLU + store

    lhs_idx = lambda bi, ji: (bi, ji, 0, 0)
    if lhs_buffers is None:
        lhs_spec = pl.BlockSpec((1, 1, R, K4), lhs_idx)
    else:  # e.g. 3 on v6e if xprof shows exposed DMA (128 MiB VMEM has headroom)
        lhs_spec = pl.BlockSpec((1, 1, R, K4), lhs_idx,
                                pipeline_mode=pl.Buffered(lhs_buffers))

    cost = pl.CostEstimate(
        flops=2 * B * H * W * 9 * C_in * C_out,
        transcendentals=0,
        bytes_accessed=int(B * nblk * R * K4 * in_itemsize
                           + wq.size * in_itemsize + shift.size * 4
                           + B * nblk * T * Wo_pad * Cp * out_itemsize))

    out = pl.pallas_call(
        kernel,
        out_shape=jax.ShapeDtypeStruct((B, nblk, T * Wo_pad, Cp), out_dtype),
        grid=(B, nblk),
        in_specs=[
            lhs_spec,
            pl.BlockSpec((2, 3, K4, Cp), lambda bi, ji: (0, 0, 0, 0)),  # resident
            pl.BlockSpec((1, Cp), lambda bi, ji: (0, 0)),               # resident
        ],
        out_specs=pl.BlockSpec((1, 1, T * Wo_pad, Cp),
                               lambda bi, ji: (bi, ji, 0, 0)),
        compiler_params=pltpu.CompilerParams(
            dimension_semantics=("parallel", "parallel"),
            vmem_limit_bytes=vmem_limit),
        cost_estimate=cost,
    )(lhs, wq, shift)

    out = out.reshape(B, Ho, Wo_pad, Cp)[:, :, :Wo, :C_out].astype(jnp.float32)
    if nchw_output:
        out = jnp.transpose(out, (0, 3, 1, 2))   # extra HBM pass; see nchw_output
    return out


def _reference(x_nchw, params, eps=1e-5):
    """Pure-JAX reference (eval-mode Conv+BN+ReLU+MaxPool) for validation."""
    w, b = params["weight"], params["bias"]
    z = lax.conv_general_dilated(
        x_nchw, w, window_strides=(1, 1), padding=((1, 1), (1, 1)),
        dimension_numbers=("NCHW", "OIHW", "NCHW"))
    z = z + b.reshape(1, -1, 1, 1)
    s = params["gamma"] / jnp.sqrt(params["running_var"] + eps)
    z = (z - params["running_mean"].reshape(1, -1, 1, 1)) * s.reshape(1, -1, 1, 1) \
        + params["beta"].reshape(1, -1, 1, 1)
    z = jnp.maximum(z, 0.0)
    return lax.reduce_window(z, -jnp.inf, lax.max,
                             window_dimensions=(1, 1, 2, 2),
                             window_strides=(1, 1, 2, 2), padding="VALID")


if __name__ == "__main__":
    B, C_in, C_out, H, W = 2, 4, 8, 16, 16
    key = jax.random.PRNGKey(0)
    kx, kw_, kb, kg, kbe, km, kv = jax.random.split(key, 7)

    x = jax.random.normal(kx, (B, C_in, H, W), dtype=jnp.float32)
    params = {
        "weight": jax.random.normal(kw_, (C_out, C_in, 3, 3), jnp.float32) * 0.1,
        "bias": jax.random.normal(kb, (C_out,), jnp.float32) * 0.1,
        "gamma": 1.0 + 0.1 * jax.random.normal(kg, (C_out,), jnp.float32),
        "beta": 0.1 * jax.random.normal(kbe, (C_out,), jnp.float32),
        "running_mean": 0.1 * jax.random.normal(km, (C_out,), jnp.float32),
        "running_var": jax.random.uniform(kv, (C_out,), jnp.float32, 0.5, 1.5),
    }

    fwd = jax.jit(my_conv_block,
                  static_argnames=("eps", "compute_dtype", "pool_rows_per_block",
                                   "lhs_buffers", "nchw_output"))
    y_ref = _reference(x, params)

    # f32 path (auto VMEM-sized row blocking): tight tolerance vs XLA reference.
    y32 = jax.block_until_ready(fwd(x, params, compute_dtype=jnp.float32))
    assert y32.shape == (B, C_out, H // 2, W // 2), y32.shape
    assert jnp.allclose(y32, y_ref, atol=1e-4, rtol=1e-4), \
        float(jnp.max(jnp.abs(y32 - y_ref)))

    # bf16 MXU path with explicit row-block tiling (exercises the 2-D grid and
    # the bf16 output writeback).
    ybf = jax.block_until_ready(
        fwd(x, params, compute_dtype=jnp.bfloat16, pool_rows_per_block=4))
    assert ybf.shape == (B, C_out, H // 2, W // 2), ybf.shape
    assert jnp.allclose(ybf, y_ref, atol=2e-2, rtol=2e-2), \
        float(jnp.max(jnp.abs(ybf - y_ref)))

    print("KERNEL_OK")
</pallas_src>

<mosaic_0001>
module attributes {stable_mosaic.version = 11 : i64} {
  func.func @kernel(%arg0: i32, %arg1: i32, %arg2: memref<1x1x144x16xf32, #tpu.memory_space<vmem>>, %arg3: memref<2x3x16x8xf32, #tpu.memory_space<vmem>>, %arg4: memref<1x8xf32, #tpu.memory_space<vmem>>, %arg5: memref<1x1x64x8xf32, #tpu.memory_space<vmem>>) attributes {dimension_semantics = [#tpu.dimension_semantics<parallel>, #tpu.dimension_semantics<parallel>], iteration_bounds = array<i64: 2, 1>, scalar_prefetch = 0 : i64, scratch_operands = 0 : i64, tpu.core_type = #tpu.core_type<tc>, window_params = [{transform_indices = @transform_0, window_bounds = array<i64: 1, 1, 144, 16>}, {pipeline_mode = #tpu.pipeline_mode<synchronous>, transform_indices = @transform_1, window_bounds = array<i64: 2, 3, 16, 8>}, {pipeline_mode = #tpu.pipeline_mode<synchronous>, transform_indices = @transform_2, window_bounds = array<i64: 1, 8>}, {transform_indices = @transform_3, window_bounds = array<i64: 1, 1, 64, 8>}]} {
    %c0 = arith.constant 0 : index
    %c0_0 = arith.constant 0 : index
    %c0_1 = arith.constant 0 : index
    %c0_2 = arith.constant 0 : index
    %0 = vector.load %arg2[%c0, %c0_0, %c0_1, %c0_2] : memref<1x1x144x16xf32, #tpu.memory_space<vmem>>, vector<1x1x144x16xf32>
    %1 = vector.shape_cast %0 : vector<1x1x144x16xf32> to vector<144x16xf32>
    %2 = vector.extract_strided_slice %1 {offsets = [0, 0], sizes = [128, 16], strides = [1, 1]} : vector<144x16xf32> to vector<128x16xf32>
    %c0_3 = arith.constant 0 : index
    %c0_4 = arith.constant 0 : index
    %c0_5 = arith.constant 0 : index
    %c0_6 = arith.constant 0 : index
    %3 = vector.load %arg3[%c0_3, %c0_4, %c0_5, %c0_6] : memref<2x3x16x8xf32, #tpu.memory_space<vmem>>, vector<1x1x16x8xf32>
    %4 = vector.shape_cast %3 : vector<1x1x16x8xf32> to vector<16x8xf32>
    %cst = arith.constant dense<0.000000e+00> : vector<128x8xf32>
    %5 = tpu.matmul %2, %4, %cst {dimension_numbers = #tpu.dot_dimension_numbers<[1], [0], [0], [1], [0, 0, 1, 1], [], []>} : vector<128x16xf32>, vector<16x8xf32>, vector<128x8xf32> -> vector<128x8xf32>
    %c1 = arith.constant 1 : index
    %c0_7 = arith.constant 0 : index
    %c0_8 = arith.constant 0 : index
    %c0_9 = arith.constant 0 : index
    %6 = vector.load %arg3[%c1, %c0_7, %c0_8, %c0_9] : memref<2x3x16x8xf32, #tpu.memory_space<vmem>>, vector<1x1x16x8xf32>
    %7 = vector.shape_cast %6 : vector<1x1x16x8xf32> to vector<16x8xf32>
    %cst_10 = arith.constant dense<0.000000e+00> : vector<128x8xf32>
    %8 = tpu.matmul %2, %7, %cst_10 {dimension_numbers = #tpu.dot_dimension_numbers<[1], [0], [0], [1], [0, 0, 1, 1], [], []>} : vector<128x16xf32>, vector<16x8xf32>, vector<128x8xf32> -> vector<128x8xf32>
    %9 = vector.extract_strided_slice %1 {offsets = [8, 0], sizes = [128, 16], strides = [1, 1]} : vector<144x16xf32> to vector<128x16xf32>
    %c0_11 = arith.constant 0 : index
    %c1_12 = arith.constant 1 : index
    %c0_13 = arith.constant 0 : index
    %c0_14 = arith.constant 0 : index
    %10 = vector.load %arg3[%c0_11, %c1_12, %c0_13, %c0_14] : memref<2x3x16x8xf32, #tpu.memory_space<vmem>>, vector<1x1x16x8xf32>
    %11 = vector.shape_cast %10 : vector<1x1x16x8xf32> to vector<16x8xf32>
    %cst_15 = arith.constant dense<0.000000e+00> : vector<128x8xf32>
    %12 = tpu.matmul %9, %11, %cst_15 {dimension_numbers = #tpu.dot_dimension_numbers<[1], [0], [0], [1], [0, 0, 1, 1], [], []>} : vector<128x16xf32>, vector<16x8xf32>, vector<128x8xf32> -> vector<128x8xf32>
    %13 = arith.addf %5, %12 : vector<128x8xf32>
    %c1_16 = arith.constant 1 : index
    %c1_17 = arith.constant 1 : index
    %c0_18 = arith.constant 0 : index
    %c0_19 = arith.constant 0 : index
    %14 = vector.load %arg3[%c1_16, %c1_17, %c0_18, %c0_19] : memref<2x3x16x8xf32, #tpu.memory_space<vmem>>, vector<1x1x16x8xf32>
    %15 = vector.shape_cast %14 : vector<1x1x16x8xf32> to vector<16x8xf32>
    %cst_20 = arith.constant dense<0.000000e+00> : vector<128x8xf32>
    %16 = tpu.matmul %9, %15, %cst_20 {dimension_numbers = #tpu.dot_dimension_numbers<[1], [0], [0], [1], [0, 0, 1, 1], [], []>} : vector<128x16xf32>, vector<16x8xf32>, vector<128x8xf32> -> vector<128x8xf32>
    %17 = arith.addf %8, %16 : vector<128x8xf32>
    %18 = vector.extract_strided_slice %1 {offsets = [16, 0], sizes = [128, 16], strides = [1, 1]} : vector<144x16xf32> to vector<128x16xf32>
    %c0_21 = arith.constant 0 : index
    %c2 = arith.constant 2 : index
    %c0_22 = arith.constant 0 : index
    %c0_23 = arith.constant 0 : index
    %19 = vector.load %arg3[%c0_21, %c2, %c0_22, %c0_23] : memref<2x3x16x8xf32, #tpu.memory_space<vmem>>, vector<1x1x16x8xf32>
    %20 = vector.shape_cast %19 : vector<1x1x16x8xf32> to vector<16x8xf32>
    %cst_24 = arith.constant dense<0.000000e+00> : vector<128x8xf32>
    %21 = tpu.matmul %18, %20, %cst_24 {dimension_numbers = #tpu.dot_dimension_numbers<[1], [0], [0], [1], [0, 0, 1, 1], [], []>} : vector<128x16xf32>, vector<16x8xf32>, vector<128x8xf32> -> vector<128x8xf32>
    %22 = arith.addf %13, %21 : vector<128x8xf32>
    %c1_25 = arith.constant 1 : index
    %c2_26 = arith.constant 2 : index
    %c0_27 = arith.constant 0 : index
    %c0_28 = arith.constant 0 : index
    %23 = vector.load %arg3[%c1_25, %c2_26, %c0_27, %c0_28] : memref<2x3x16x8xf32, #tpu.memory_space<vmem>>, vector<1x1x16x8xf32>
    %24 = vector.shape_cast %23 : vector<1x1x16x8xf32> to vector<16x8xf32>
    %cst_29 = arith.constant dense<0.000000e+00> : vector<128x8xf32>
    %25 = tpu.matmul %18, %24, %cst_29 {dimension_numbers = #tpu.dot_dimension_numbers<[1], [0], [0], [1], [0, 0, 1, 1], [], []>} : vector<128x16xf32>, vector<16x8xf32>, vector<128x8xf32> -> vector<128x8xf32>
    %26 = arith.addf %17, %25 : vector<128x8xf32>
    %27 = arith.maximumf %22, %26 : vector<128x8xf32>
    %28 = vector.shape_cast %27 : vector<128x8xf32> to vector<8x16x8xf32>
    %29 = vector.extract_strided_slice %28 {offsets = [0, 0, 0], sizes = [8, 8, 8], strides = [1, 1, 1]} : vector<8x16x8xf32> to vector<8x8x8xf32>
    %30 = vector.extract_strided_slice %28 {offsets = [0, 8, 0], sizes = [8, 8, 8], strides = [1, 1, 1]} : vector<8x16x8xf32> to vector<8x8x8xf32>
    %31 = arith.maximumf %29, %30 : vector<8x8x8xf32>
    %32 = vector.shape_cast %31 : vector<8x8x8xf32> to vector<64x8xf32>
    %c0_30 = arith.constant 0 : index
    %c0_31 = arith.constant 0 : index
    %33 = vector.load %arg4[%c0_30, %c0_31] : memref<1x8xf32, #tpu.memory_space<vmem>>, vector<1x8xf32>
    %34 = vector.broadcast %33 : vector<1x8xf32> to vector<64x8xf32>
    %35 = arith.addf %32, %34 : vector<64x8xf32>
    %cst_32 = arith.constant 0.000000e+00 : f32
    %36 = vector.broadcast %cst_32 : f32 to vector<64x8xf32>
    %37 = arith.maximumf %35, %36 : vector<64x8xf32>
    %c0_33 = arith.constant 0 : index
    %c0_34 = arith.constant 0 : index
    %c0_35 = arith.constant 0 : index
    %c0_36 = arith.constant 0 : index
    %38 = vector.load %arg5[%c0_33, %c0_34, %c0_35, %c0_36] : memref<1x1x64x8xf32, #tpu.memory_space<vmem>>, vector<1x1x64x8xf32>
    %39 = vector.shape_cast %38 : vector<1x1x64x8xf32> to vector<64x8xf32>
    %40 = vector.shape_cast %37 : vector<64x8xf32> to vector<1x1x64x8xf32>
    tpu.vector_store %arg5[%c0_33, %c0_34, %c0_35, %c0_36], %40 {strides = array<i32>} : memref<1x1x64x8xf32, #tpu.memory_space<vmem>>, vector<1x1x64x8xf32>,
    return
  }
  func.func @transform_0(%arg0: i32, %arg1: i32) -> (i32, i32, i32, i32) {
    %c0_i32 = arith.constant 0 : i32
    %c0_i32_0 = arith.constant 0 : i32
    %c0_i32_1 = arith.constant 0 : i32
    return %arg0, %arg1, %c0_i32, %c0_i32_0 : i32, i32, i32, i32
  }
  func.func @transform_1(%arg0: i32, %arg1: i32) -> (i32, i32, i32, i32) {
    %c0_i32 = arith.constant 0 : i32
    %c0_i32_0 = arith.constant 0 : i32
    %c0_i32_1 = arith.constant 0 : i32
    %c0_i32_2 = arith.constant 0 : i32
    %c0_i32_3 = arith.constant 0 : i32
    return %c0_i32, %c0_i32_0, %c0_i32_1, %c0_i32_2 : i32, i32, i32, i32
  }
  func.func @transform_2(%arg0: i32, %arg1: i32) -> (i32, i32) {
    %c0_i32 = arith.constant 0 : i32
    %c0_i32_0 = arith.constant 0 : i32
    %c0_i32_1 = arith.constant 0 : i32
    return %c0_i32, %c0_i32_0 : i32, i32
  }
  func.func @transform_3(%arg0: i32, %arg1: i32) -> (i32, i32, i32, i32) {
    %c0_i32 = arith.constant 0 : i32
    %c0_i32_0 = arith.constant 0 : i32
    %c0_i32_1 = arith.constant 0 : i32
    return %arg0, %arg1, %c0_i32, %c0_i32_0 : i32, i32, i32, i32
  }
}

</mosaic_0001>

<bundles_post_ra>
// kernel: my_conv_block.1
= control target key start
LH: loop header
LB: loop body
LE: loop exit
PB: predicated region body
PF: predicated region fallthrough
CT: control target
= control target key end

     0   :  { %s1898_s12 = smov 0   ;;  %s1900_s13 = smov 0   ;;  %s2236_s0 = inlined_call_operand.vmem [shape: f32[2,1,144,16], index: 0, kind: input, shape index: {}]   ;;  %s2237_s1 = inlined_call_operand.vmem [shape: f32[2,3,16,8], index: 1, kind: input, shape index: {}]   ;;  %s2238_s2 = inlined_call_operand.vmem [shape: f32[1,8], index: 2, kind: input, shape index: {}]   ;;  %s2239_s3 = inlined_call_operand.vmem [shape: f32[2,1,64,8], index: 3, kind: output, shape index: {}]  }
   0x1   :  { %s1902_s14 = smov 0  }
   0x2 LB: > { %s25_s15 = sadd.s32 1, %s1872_s13  ;;  %p1351_p0 = scmp.ge.s32.totalorder %s1876_s14, 1  ;;  %s1876_s14 = sphi %s1902_s14, %s13_s14   ;;  %s1872_s13 = sphi %s1900_s13, %s2241_s13   ;;  %s1868_s12 = sphi %s1898_s12, %s2240_s12  }
   0x3   : > { %p27_p1 = scmp.ge.s32.totalorder %s25_s15, 2  ;;  %p157_p2 = scmp.lt.s32.totalorder %s1876_s14, 3 }
   0x5   : > { %s2243_s15 = smov (%p27_p1, %s25_s15), 0  ;;  %p158_p3 = pnand %p1351_p0, %p157_p2 }
   0x6   : > { %v1357_v0 = vld [vmem:[%s2237_s1 + $0x10] sm:$0xff] (!%p158_p3)  ;;  %v1358_v1 = vld [vmem:[%s2237_s1 + $0x18] sm:$0xff] (!%p158_p3)  ;;  %v1391_v2 = vld [vmem:[%s2237_s1 + $0x40] sm:$0xff] (!%p158_p3)  ;;  %p189_p4 = scmp.lt.s32.totalorder (!%p158_p3), %s1868_s12, 1  ;;  %vm233_vm0 = vcmask (!%p158_p3), 130048   ;;  %vm1246_vm1 = vcmask (!%p158_p3), 64512  }
   0x7   : > { %161 = sbr.rel (%p158_p3) target bundleno = 334 (0x14e), region = 32  ;;  %v1741_v3 = vpack.c.bf16 (!%p158_p3), %v1358_v1, %v1357_v0  ;;  %v1392_v4 = vld [vmem:[%s2237_s1 + $0x48] sm:$0xff] (!%p158_p3)  ;;  %v225_v5 = vld [vmem:[%s2237_s1] sm:$0xff] (!%p158_p3)  ;;  %v1355_v9 = vld [vmem:[%s2237_s1 + $0x30] sm:$0xff] (!%p158_p3) }
   0x8   : > { %v226_v6 = vld [vmem:[%s2237_s1 + $0x8] sm:$0xff] (!%p158_p3)  ;;  %v1749_v7 = vpack.c.bf16 (!%p158_p3), %v1392_v4, %v1391_v2  ;;  %v1356_v10 = vld [vmem:[%s2237_s1 + $0x38] sm:$0xff] (!%p158_p3)  ;;  %v1425_v12 = vld [vmem:[%s2237_s1 + $0x20] sm:$0xff] (!%p158_p3) }
   0x9   : > { %v1745_v8 = vpack.c.bf16 (!%p158_p3), %v226_v6, %v225_v5  ;;  %1742 = vmatprep.subr.bf16.mxu0 (!%p158_p3), %v1741_v3  ;;  %v1753_v11 = vpack.c.bf16 (!%p158_p3), %v1356_v10, %v1355_v9  ;;  %v1426_v13 = vld [vmem:[%s2237_s1 + $0x28] sm:$0xff] (!%p158_p3)  ;;  %v1443_v14 = vld [vmem:[%s2237_s1 + $0x50] sm:$0xff] (!%p158_p3)  ;;  %v1444_v15 = vld [vmem:[%s2237_s1 + $0x58] sm:$0xff] (!%p158_p3) }
   0xa   : > { %1750 = vmatprep.subr.bf16.mxu1 (!%p158_p3), %v1749_v7  ;;  %1744 = vmatpush3.bf16.msra.mxu0 (!%p158_p3), %v1741_v3  ;;  %v1757_v19 = vpack.c.bf16 (!%p158_p3), %v1426_v13, %v1425_v12  ;;  %v1761_v20 = vpack.c.bf16 (!%p158_p3), %v1444_v15, %v1443_v14  ;;  %v2195_v42 = vld [vmem:[%s2238_s2] ss:$0 sm:$0xff] (!%p158_p3) }
   0xb   : > { %1752 = vmatpush3.bf16.msra.mxu1 (!%p158_p3), %v1749_v7  ;;  %1746 = vmatprep.subr.bf16.mxu0 (!%p158_p3), %v1745_v8 }
   0xc   : > { %1754 = vmatprep.subr.bf16.mxu1 (!%p158_p3), %v1753_v11 }
   0xe   : > { %s2245_s12 = smov (!%p189_p4, %s1868_s12), 1 }
   0xf   : > { %s1829_s5 = smul.u32 144, %s2245_s12  ;;  %s1464_s23 = sshll.u32 %s2245_s12, 6 }
  0x10   : > { %s2202_s26 = scalar_lea.vmem %s2239_s3, %s1464_s23 }
  0x11   : > { %s1958_s20 = scalar_lea.vmem %s2236_s0, %s1829_s5 }
  0x12   : > { %v208_v16 = vld [vmem:[%s1958_s20 + $0x8] sm:$0xff]  ;;  %v1962_v17 = vld [vmem:[%s1958_s20 + $0x10] sm:$0xff]  ;;  %v1967_v18 = vld [vmem:[%s1958_s20 + $0x18] sm:$0xff] }
  0x13   : > { %1577 = vmatprep.mubr.msk.f32.mxu0 %vm233_vm0, %v208_v16  ;;  %1633 = vmatprep.mubr.msk.f32.mxu1 %vm233_vm0, %v208_v16  ;;  %v1974_v21 = vld [vmem:[%s1958_s20 + $0x20] sm:$0xff]  ;;  %v1981_v22 = vld [vmem:[%s1958_s20 + $0x28] sm:$0xff]  ;;  %v1992_v23 = vld [vmem:[%s1958_s20 + $0x30] sm:$0xff] }
  0x14   : > { %1578 = vmatmul.mubr.msk.f32.vlgmr.msra.gmra.mrb[0].mxu0 %vm233_vm0, %v1962_v17  ;;  %1634 = vmatmul.mubr.msk.f32.vlgmr.msra.gmra.mrb[0].mxu1 %vm233_vm0, %v1962_v17  ;;  %v1995_v24 = vld [vmem:[%s1958_s20 + $0x38] sm:$0xff]  ;;  %v2006_v25 = vld [vmem:[%s1958_s20 + $0x40] sm:$0xff]  ;;  %v2009_v26 = vld [vmem:[%s1958_s20 + $0x48] sm:$0xff] }
  0x15   : > { %1748 = vmatpush3.bf16.msra.mxu0 %v1745_v8  ;;  %1756 = vmatpush3.bf16.msra.mxu1 %v1753_v11  ;;  %v2020_v27 = vld [vmem:[%s1958_s20 + $0x50] sm:$0xff]  ;;  %v2023_v28 = vld [vmem:[%s1958_s20 + $0x58] sm:$0xff]  ;;  %v2034_v29 = vld [vmem:[%s1958_s20 + $0x60] sm:$0xff] }
  0x16   : > { %1580 = vmatprep.mubr.msk.f32.mxu0 %vm233_vm0, %v1967_v18  ;;  %1636 = vmatprep.mubr.msk.f32.mxu1 %vm233_vm0, %v1967_v18  ;;  %v2037_v30 = vld [vmem:[%s1958_s20 + $0x68] sm:$0xff]  ;;  %v2048_v31 = vld [vmem:[%s1958_s20 + $0x70] sm:$0xff]  ;;  %v2051_v32 = vld [vmem:[%s1958_s20 + $0x78] sm:$0xff] }
  0x17   : > { %1758 = vmatprep.subr.bf16.mxu0 %v1757_v19  ;;  %1762 = vmatprep.subr.bf16.mxu1 %v1761_v20  ;;  %v2062_v33 = vld [vmem:[%s1958_s20 + $0x80] sm:$0xff]  ;;  %v224_v35 = vld [vmem:[%s1958_s20 + $0x88] sm:$0xff] }
  0x18   : > { %1581 = vmatmul.mubr.msk.f32.gmra.mrb[2].mxu0 %vm233_vm0, %v1974_v21  ;;  %1637 = vmatmul.mubr.msk.f32.gmra.mrb[2].mxu1 %vm233_vm0, %v1974_v21  ;;  %v207_v34 = vld [vmem:[%s1958_s20] sm:$0xff] }
  0x19   : > { %1583 = vmatprep.mubr.msk.f32.mxu0 %vm233_vm0, %v1981_v22  ;;  %1639 = vmatprep.mubr.msk.f32.mxu1 %vm233_vm0, %v1981_v22 }
  0x1c   : > { %1584 = vmatmul.mubr.msk.f32.gmra.mrb[4].mxu0 %vm233_vm0, %v1992_v23  ;;  %1640 = vmatmul.mubr.msk.f32.gmra.mrb[4].mxu1 %vm233_vm0, %v1992_v23 }
  0x1d   : > { %1586 = vmatprep.mubr.msk.f32.mxu0 %vm233_vm0, %v1995_v24  ;;  %1642 = vmatprep.mubr.msk.f32.mxu1 %vm233_vm0, %v1995_v24 }
  0x20   : > { %1587 = vmatmul.mubr.msk.f32.gmra.mrb[6].mxu0 %vm233_vm0, %v2006_v25  ;;  %1643 = vmatmul.mubr.msk.f32.gmra.mrb[6].mxu1 %vm233_vm0, %v2006_v25 }
  0x21   : > { %1589 = vmatprep.mubr.msk.f32.mxu0 %vm233_vm0, %v2009_v26  ;;  %1645 = vmatprep.mubr.msk.f32.mxu1 %vm233_vm0, %v2009_v26 }
  0x24   : > { %1590 = vmatmul.mubr.msk.f32.gmra.mrb[8].mxu0 %vm233_vm0, %v2020_v27  ;;  %1646 = vmatmul.mubr.msk.f32.gmra.mrb[8].mxu1 %vm233_vm0, %v2020_v27 }
  0x25   : > { %1592 = vmatprep.mubr.msk.f32.mxu0 %vm233_vm0, %v2023_v28  ;;  %1648 = vmatprep.mubr.msk.f32.mxu1 %vm233_vm0, %v2023_v28 }
  0x28   : > { %1593 = vmatmul.mubr.msk.f32.gmra.mrb[10].mxu0 %vm233_vm0, %v2034_v29  ;;  %1649 = vmatmul.mubr.msk.f32.gmra.mrb[10].mxu1 %vm233_vm0, %v2034_v29 }
  0x29   : > { %1595 = vmatprep.mubr.msk.f32.mxu0 %vm233_vm0, %v2037_v30  ;;  %1651 = vmatprep.mubr.msk.f32.mxu1 %vm233_vm0, %v2037_v30 }
  0x2c   : > { %1596 = vmatmul.mubr.msk.f32.gmra.mrb[12].mxu0 %vm233_vm0, %v2048_v31  ;;  %1652 = vmatmul.mubr.msk.f32.gmra.mrb[12].mxu1 %vm233_vm0, %v2048_v31 }
  0x2d   : > { %1598 = vmatprep.mubr.msk.f32.mxu0 %vm233_vm0, %v2051_v32  ;;  %1654 = vmatprep.mubr.msk.f32.mxu1 %vm233_vm0, %v2051_v32 }
  0x30   : > { %1599 = vmatmul.mubr.msk.f32.gmra.mrb[14].mxu0 %vm233_vm0, %v2062_v33  ;;  %1655 = vmatmul.mubr.msk.f32.gmra.mrb[14].mxu1 %vm233_vm0, %v2062_v33 }
  0x31   : > { %1605 = vmatprep.mubr.msk.f32.mxu0 %vm233_vm0, %v207_v34  ;;  %1661 = vmatprep.mubr.msk.f32.mxu1 %vm233_vm0, %v207_v34 }
  0x34   : > { %1606 = vmatmul.mubr.msk.f32.vlgmr.msra.gmra.mrb[0].mxu0 %vm233_vm0, %v208_v16  ;;  %1662 = vmatmul.mubr.msk.f32.vlgmr.msra.gmra.mrb[0].mxu1 %vm233_vm0, %v208_v16 }
  0x35   : > { %1760 = vmatpush3.bf16.msra.mxu0 %v1757_v19  ;;  %1764 = vmatpush3.bf16.msra.mxu1 %v1761_v20 }
  0x36   : > { %1608 = vmatprep.mubr.msk.f32.mxu0 %vm233_vm0, %v1962_v17  ;;  %1664 = vmatprep.mubr.msk.f32.mxu1 %vm233_vm0, %v1962_v17 }
  0x38   : > { %1609 = vmatmul.mubr.msk.f32.gmra.mrb[2].mxu0 %vm233_vm0, %v1967_v18  ;;  %1665 = vmatmul.mubr.msk.f32.gmra.mrb[2].mxu1 %vm233_vm0, %v1967_v18 }
  0x39   : > { %1611 = vmatprep.mubr.msk.f32.mxu0 %vm233_vm0, %v1974_v21  ;;  %1667 = vmatprep.mubr.msk.f32.mxu1 %vm233_vm0, %v1974_v21 }
  0x3c   : > { %1612 = vmatmul.mubr.msk.f32.gmra.mrb[4].mxu0 %vm233_vm0, %v1981_v22  ;;  %1668 = vmatmul.mubr.msk.f32.gmra.mrb[4].mxu1 %vm233_vm0, %v1981_v22 }
  0x3d   : > { %1614 = vmatprep.mubr.msk.f32.mxu0 %vm233_vm0, %v1992_v23  ;;  %1670 = vmatprep.mubr.msk.f32.mxu1 %vm233_vm0, %v1992_v23 }
  0x40   : > { %1615 = vmatmul.mubr.msk.f32.gmra.mrb[6].mxu0 %vm233_vm0, %v1995_v24  ;;  %1671 = vmatmul.mubr.msk.f32.gmra.mrb[6].mxu1 %vm233_vm0, %v1995_v24 }
  0x41   : > { %1617 = vmatprep.mubr.msk.f32.mxu0 %vm233_vm0, %v2006_v25  ;;  %1673 = vmatprep.mubr.msk.f32.mxu1 %vm233_vm0, %v2006_v25 }
  0x44   : > { %1618 = vmatmul.mubr.msk.f32.gmra.mrb[8].mxu0 %vm233_vm0, %v2009_v26  ;;  %1674 = vmatmul.mubr.msk.f32.gmra.mrb[8].mxu1 %vm233_vm0, %v2009_v26 }
  0x45   : > { %1620 = vmatprep.mubr.msk.f32.mxu0 %vm233_vm0, %v2020_v27  ;;  %1676 = vmatprep.mubr.msk.f32.mxu1 %vm233_vm0, %v2020_v27 }
  0x48   : > { %1621 = vmatmul.mubr.msk.f32.gmra.mrb[10].mxu0 %vm233_vm0, %v2023_v28  ;;  %1677 = vmatmul.mubr.msk.f32.gmra.mrb[10].mxu1 %vm233_vm0, %v2023_v28 }
  0x49   : > { %1623 = vmatprep.mubr.msk.f32.mxu0 %vm233_vm0, %v2034_v29  ;;  %1679 = vmatprep.mubr.msk.f32.mxu1 %vm233_vm0, %v2034_v29 }
  0x4c   : > { %1624 = vmatmul.mubr.msk.f32.gmra.mrb[12].mxu0 %vm233_vm0, %v2037_v30  ;;  %1680 = vmatmul.mubr.msk.f32.gmra.mrb[12].mxu1 %vm233_vm0, %v2037_v30 }
  0x4d   : > { %1626 = vmatprep.mubr.msk.f32.mxu0 %vm233_vm0, %v2048_v31  ;;  %1682 = vmatprep.mubr.msk.f32.mxu1 %vm233_vm0, %v2048_v31 }
  0x50   : > { %1627 = vmatmul.mubr.msk.f32.gmra.mrb[14].mxu0 %vm233_vm0, %v2051_v32  ;;  %1683 = vmatmul.mubr.msk.f32.gmra.mrb[14].mxu1 %vm233_vm0, %v2051_v32 }
  0x51   : > { %1689 = vmatprep.mubr.msk.f32.mxu0 %vm233_vm0, %v1962_v17  ;;  %1717 = vmatprep.mubr.msk.f32.mxu1 %vm233_vm0, %v1962_v17 }
  0x54   : > { %1690 = vmatmul.mubr.msk.f32.vlgmr.msra.gmra.mrb[0].mxu0 %vm233_vm0, %v1967_v18  ;;  %1718 = vmatmul.mubr.msk.f32.vlgmr.msra.gmra.mrb[0].mxu1 %vm233_vm0, %v1967_v18 }
  0x55   : > { %1692 = vmatprep.mubr.msk.f32.mxu0 %vm233_vm0, %v1974_v21  ;;  %1720 = vmatprep.mubr.msk.f32.mxu1 %vm233_vm0, %v1974_v21 }
  0x58   : > { %1693 = vmatmul.mubr.msk.f32.gmra.mrb[2].mxu0 %vm233_vm0, %v1981_v22  ;;  %1721 = vmatmul.mubr.msk.f32.gmra.mrb[2].mxu1 %vm233_vm0, %v1981_v22 }
  0x59   : > { %1695 = vmatprep.mubr.msk.f32.mxu0 %vm233_vm0, %v1992_v23  ;;  %1723 = vmatprep.mubr.msk.f32.mxu1 %vm233_vm0, %v1992_v23 }
  0x5c   : > { %1696 = vmatmul.mubr.msk.f32.gmra.mrb[4].mxu0 %vm233_vm0, %v1995_v24  ;;  %1724 = vmatmul.mubr.msk.f32.gmra.mrb[4].mxu1 %vm233_vm0, %v1995_v24 }
  0x5d   : > { %1698 = vmatprep.mubr.msk.f32.mxu0 %vm233_vm0, %v2006_v25  ;;  %1726 = vmatprep.mubr.msk.f32.mxu1 %vm233_vm0, %v2006_v25 }
  0x60   : > { %1699 = vmatmul.mubr.msk.f32.gmra.mrb[6].mxu0 %vm233_vm0, %v2009_v26  ;;  %1727 = vmatmul.mubr.msk.f32.gmra.mrb[6].mxu1 %vm233_vm0, %v2009_v26 }
  0x61   : > { %1701 = vmatprep.mubr.msk.f32.mxu0 %vm233_vm0, %v2020_v27  ;;  %1729 = vmatprep.mubr.msk.f32.mxu1 %vm233_vm0, %v2020_v27 }
  0x64   : > { %1702 = vmatmul.mubr.msk.f32.gmra.mrb[8].mxu0 %vm233_vm0, %v2023_v28  ;;  %1730 = vmatmul.mubr.msk.f32.gmra.mrb[8].mxu1 %vm233_vm0, %v2023_v28 }
  0x65   : > { %1704 = vmatprep.mubr.msk.f32.mxu0 %vm233_vm0, %v2034_v29  ;;  %1732 = vmatprep.mubr.msk.f32.mxu1 %vm233_vm0, %v2034_v29 }
  0x68   : > { %1705 = vmatmul.mubr.msk.f32.gmra.mrb[10].mxu0 %vm233_vm0, %v2037_v30  ;;  %1733 = vmatmul.mubr.msk.f32.gmra.mrb[10].mxu1 %vm233_vm0, %v2037_v30 }
  0x69   : > { %1707 = vmatprep.mubr.msk.f32.mxu0 %vm233_vm0, %v2048_v31  ;;  %1735 = vmatprep.mubr.msk.f32.mxu1 %vm233_vm0, %v2048_v31 }
  0x6c   : > { %1708 = vmatmul.mubr.msk.f32.gmra.mrb[12].mxu0 %vm233_vm0, %v2051_v32  ;;  %1736 = vmatmul.mubr.msk.f32.gmra.mrb[12].mxu1 %vm233_vm0, %v2051_v32 }
  0x6d   : > { %1710 = vmatprep.mubr.msk.f32.mxu0 %vm233_vm0, %v2062_v33  ;;  %1738 = vmatprep.mubr.msk.f32.mxu1 %vm233_vm0, %v2062_v33 }
  0x70   : > { %1711 = vmatmul.mubr.msk.f32.gmra.mrb[14].mxu0 %vm233_vm0, %v224_v35  ;;  %1739 = vmatmul.mubr.msk.f32.gmra.mrb[14].mxu1 %vm233_vm0, %v224_v35 }
 0x127   : > { %v1691_v36 = vpop.f32.mrb[0].mxu0  ;;  %v1719_v37 = vpop.f32.mrb[0].mxu1 }
 0x128   : > { %v1200_v38 = vmax.f32 %v1691_v36, %v1719_v37  ;;  %v940_v39 = vpop.f32.mrb[1].mxu0  ;;  %v1104_v40 = vpop.f32.mrb[1].mxu1 }
 0x129   : > { %v1199_v41 = vmax.f32 %v940_v39, %v1104_v40 }
 0x12b   : > { %v1215_v43 = vmax.f32 %v1199_v41, %v1200_v38  ;;  %v1694_v44 = vpop.f32.mrb[2].mxu0  ;;  %v1722_v45 = vpop.f32.mrb[2].mxu1 }
 0x12c   : > { %v1202_v46 = vmax.f32 %v1694_v44, %v1722_v45  ;;  %v950_v47 = vpop.f32.mrb[3].mxu0  ;;  %v1114_v48 = vpop.f32.mrb[3].mxu1 }
 0x12d   : > { %v1230_v49 = vadd.f32 %v2195_v42, %v1215_v43  ;;  %v1201_v50 = vmax.f32 %v950_v47, %v1114_v48 }
 0x12f   : > { %v1238_v51 = vmax.f32 %v1230_v49, 0.0  ;;  %v1216_v52 = vmax.f32 %v1201_v50, %v1202_v46  ;;  %v1697_v53 = vpop.f32.mrb[4].mxu0  ;;  %v1725_v54 = vpop.f32.mrb[4].mxu1 }
 0x130   : > { %v1204_v55 = vmax.f32 %v1697_v53, %v1725_v54  ;;  %v960_v56 = vpop.f32.mrb[5].mxu0  ;;  %v1124_v57 = vpop.f32.mrb[5].mxu1 }
 0x131   : > { %1247 = vst.msk [vmem:[%s2202_s26] sm:$0xff] %vm1246_vm1, %v1238_v51  ;;  %v1231_v58 = vadd.f32 %v2195_v42, %v1216_v52  ;;  %v1203_v59 = vmax.f32 %v960_v56, %v1124_v57 }
 0x133   : > { %v1239_v60 = vmax.f32 %v1231_v58, 0.0  ;;  %v1217_v61 = vmax.f32 %v1203_v59, %v1204_v55  ;;  %v1700_v62 = vpop.f32.mrb[6].mxu0  ;;  %v1728_v63 = vpop.f32.mrb[6].mxu1 }
 0x134   : > { %v1206_v0 = vmax.f32 %v1700_v62, %v1728_v63  ;;  %v970_v1 = vpop.f32.mrb[7].mxu0  ;;  %v1134_v2 = vpop.f32.mrb[7].mxu1 }
 0x135   : > { %1248 = vst.msk [vmem:[%s2202_s26 + $0x8] sm:$0xff] %vm1246_vm1, %v1239_v60  ;;  %v1232_v3 = vadd.f32 %v2195_v42, %v1217_v61  ;;  %v1205_v4 = vmax.f32 %v970_v1, %v1134_v2 }
 0x137   : > { %v1240_v5 = vmax.f32 %v1232_v3, 0.0  ;;  %v1218_v6 = vmax.f32 %v1205_v4, %v1206_v0  ;;  %v1703_v7 = vpop.f32.mrb[8].mxu0  ;;  %v1731_v8 = vpop.f32.mrb[8].mxu1 }
 0x138   : > { %v1208_v9 = vmax.f32 %v1703_v7, %v1731_v8  ;;  %v980_v10 = vpop.f32.mrb[9].mxu0  ;;  %v1144_v11 = vpop.f32.mrb[9].mxu1 }
 0x139   : > { %1249 = vst.msk [vmem:[%s2202_s26 + $0x10] sm:$0xff] %vm1246_vm1, %v1240_v5  ;;  %v1233_v12 = vadd.f32 %v2195_v42, %v1218_v6  ;;  %v1207_v13 = vmax.f32 %v980_v10, %v1144_v11 }
 0x13b   : > { %v1241_v14 = vmax.f32 %v1233_v12, 0.0  ;;  %v1219_v15 = vmax.f32 %v1207_v13, %v1208_v9  ;;  %v1706_v16 = vpop.f32.mrb[10].mxu0  ;;  %v1734_v17 = vpop.f32.mrb[10].mxu1 }
 0x13c   : > { %v1210_v18 = vmax.f32 %v1706_v16, %v1734_v17  ;;  %v990_v19 = vpop.f32.mrb[11].mxu0  ;;  %v1154_v20 = vpop.f32.mrb[11].mxu1 }
 0x13d   : > { %1250 = vst.msk [vmem:[%s2202_s26 + $0x18] sm:$0xff] %vm1246_vm1, %v1241_v14  ;;  %v1234_v21 = vadd.f32 %v2195_v42, %v1219_v15  ;;  %v1209_v22 = vmax.f32 %v990_v19, %v1154_v20 }
 0x13f   : > { %v1242_v23 = vmax.f32 %v1234_v21, 0.0  ;;  %v1220_v24 = vmax.f32 %v1209_v22, %v1210_v18  ;;  %v1709_v25 = vpop.f32.mrb[12].mxu0  ;;  %v1737_v26 = vpop.f32.mrb[12].mxu1 }
 0x140   : > { %v1212_v27 = vmax.f32 %v1709_v25, %v1737_v26  ;;  %v1000_v28 = vpop.f32.mrb[13].mxu0  ;;  %v1164_v29 = vpop.f32.mrb[13].mxu1 }
 0x141   : > { %1251 = vst.msk [vmem:[%s2202_s26 + $0x20] sm:$0xff] %vm1246_vm1, %v1242_v23  ;;  %v1235_v30 = vadd.f32 %v2195_v42, %v1220_v24  ;;  %v1211_v31 = vmax.f32 %v1000_v28, %v1164_v29 }
 0x143   : > { %v1243_v32 = vmax.f32 %v1235_v30, 0.0  ;;  %v1221_v33 = vmax.f32 %v1211_v31, %v1212_v27  ;;  %v1712_v34 = vpop.f32.mrb[14].mxu0  ;;  %v1740_v35 = vpop.f32.mrb[14].mxu1 }
 0x144   : > { %v1214_v36 = vmax.f32 %v1712_v34, %v1740_v35  ;;  %v1010_v37 = vpop.f32.mrb[15].mxu0  ;;  %v1174_v38 = vpop.f32.mrb[15].mxu1 }
 0x145   : > { %1252 = vst.msk [vmem:[%s2202_s26 + $0x28] sm:$0xff] %vm1246_vm1, %v1243_v32  ;;  %v1236_v39 = vadd.f32 %v2195_v42, %v1221_v33  ;;  %v1213_v40 = vmax.f32 %v1010_v37, %v1174_v38 }
 0x147   : > { %v1244_v41 = vmax.f32 %v1236_v39, 0.0  ;;  %v1222_v43 = vmax.f32 %v1213_v40, %v1214_v36 }
 0x149   : > { %1253 = vst.msk [vmem:[%s2202_s26 + $0x30] sm:$0xff] %vm1246_vm1, %v1244_v41  ;;  %v1237_v44 = vadd.f32 %v2195_v42, %v1222_v43 }
 0x14b   : > { %v1245_v45 = vmax.f32 %v1237_v44, 0.0 }
 0x14d   : > { %1254 = vst.msk [vmem:[%s2202_s26 + $0x38] sm:$0xff] %vm1246_vm1, %v1245_v45 }
 0x14e PF: > { %s13_s14 = sadd.s32 1, %s1876_s14   ;;  %s2240_s12 = smov %s1872_s13 }
 0x14f   : > { %p10_p5 = scmp.ge.s32.totalorder %s13_s14, 4   ;;  %s2241_s13 = smov %s2243_s15 }
 0x151   :  { %12 = sbr.rel (!%p10_p5) target bundleno = 2 (0x2), region = 67 }

</bundles_post_ra>
